<compile_context>
chip_gen: v7x
topology: tpu7x:2x2x1
jax: 0.10.0
libtpu: 0.0.40
codegen_flags: <defaults>
</compile_context>

<pallas_src>
import functools

import jax
import jax.numpy as jnp
from jax.experimental import pallas as pl
from jax.experimental.pallas import tpu as pltpu

H1, H2, OUT = 128, 64, 2


def _round_up(n, m):
    return (n + m - 1) // m * m


def _mlp_kernel(x_ref, w1_ref, b1_ref, w2_ref, b2_ref, w3_ref, b3_ref, o_ref):
    # Three MXU matmuls (bf16 inputs, f32 accumulation) + f32 VPU bias/ReLU.
    # x is cast to bf16 in-kernel (free under a mem-bound roofline); all weights
    # are resident in VMEM; the x tile and the narrow (bb, 2) output are the
    # only arrays pipelined over the batch grid.
    x = x_ref[...].astype(jnp.bfloat16)                               # (bb, D)
    h1 = jnp.dot(x, w1_ref[...], preferred_element_type=jnp.float32)
    h1 = jnp.maximum(h1 + b1_ref[...], 0.0)                           # f32
    h2 = jnp.dot(h1.astype(jnp.bfloat16), w2_ref[...],
                 preferred_element_type=jnp.float32)
    h2 = jnp.maximum(h2 + b2_ref[...], 0.0)                           # f32
    out = jnp.dot(h2.astype(jnp.bfloat16), w3_ref[...],
                  preferred_element_type=jnp.float32)
    o_ref[...] = (out + b3_ref[...]).astype(o_ref.dtype)              # (bb, 2) f32


@functools.partial(jax.jit, static_argnames=("block_b",))
def metaphor_nn_forward(x, params, *, block_b=4096):
    """x: (B, input_size) f32. params: dict of w1,b1,w2,b2,w3,b3 (weights (in,out))."""
    B, D = x.shape

    # Rough per-row VMEM bytes: double-buffered f32 x tile + in-kernel bf16 copy
    # + f32/bf16 h1,h2 intermediates + double-buffered f32 output.
    per_row = 8 * D + 2 * D + 6 * H1 + 6 * H2 + 8 * OUT
    w_bytes = 2 * 2 * (D * H1 + H1 * H2 + H2 * OUT) + 2 * 4 * (H1 + H2 + OUT)
    budget = 24 * 1024 * 1024 - w_bytes           # keep well under v7x's 64 MiB
    vmem_rows = max(8, budget // per_row)

    # Batch tile: multiple of 8, at least 2 grid steps (v7x megacore), and
    # bounded by the VMEM budget above.
    bb = min(block_b, vmem_rows, _round_up(max(pl.cdiv(B, 2), 1), 8))
    bb = max(8, bb - bb % 8)
    grid = (pl.cdiv(B, bb),)

    # Weights as bf16 (tiny, resident); biases stay f32.
    w1 = params["w1"].astype(jnp.bfloat16)
    w2 = params["w2"].astype(jnp.bfloat16)
    w3 = params["w3"].astype(jnp.bfloat16)
    b1 = params["b1"].astype(jnp.float32)
    b2 = params["b2"].astype(jnp.float32)
    b3 = params["b3"].astype(jnp.float32)

    const = lambda shape: pl.BlockSpec(shape, lambda i: (0, 0))  # resident operand

    flops = 2 * B * (D * H1 + H1 * H2 + H2 * OUT)
    bytes_accessed = (4 * B * D + 4 * B * OUT
                      + 2 * (D * H1 + H1 * H2 + H2 * OUT)
                      + 4 * (H1 + H2 + OUT))

    return pl.pallas_call(
        _mlp_kernel,
        out_shape=jax.ShapeDtypeStruct((B, OUT), jnp.float32),
        grid=grid,
        in_specs=[
            pl.BlockSpec((bb, D), lambda i: (i, 0)),   # x: tiled over batch, unpadded
            const((D, H1)), const((1, H1)),
            const((H1, H2)), const((1, H2)),
            const((H2, OUT)), const((1, OUT)),
        ],
        out_specs=pl.BlockSpec((bb, OUT), lambda i: (i, 0)),   # narrow f32 output
        compiler_params=pltpu.CompilerParams(
            dimension_semantics=("parallel",),
            vmem_limit_bytes=64 * 1024 * 1024,
        ),
        cost_estimate=pl.CostEstimate(flops=flops, transcendentals=0,
                                      bytes_accessed=bytes_accessed),
    )(x, w1, b1, w2, b2, w3, b3)


def init_params(key, input_size):
    """Deterministic init mirroring nn.Linear default (uniform +/- 1/sqrt(fan_in))."""
    dims = [(input_size, H1), (H1, H2), (H2, OUT)]
    params = {}
    for idx, (fan_in, fan_out) in enumerate(dims, start=1):
        key, kw, kb = jax.random.split(key, 3)
        bound = 1.0 / jnp.sqrt(jnp.asarray(fan_in, jnp.float32))
        params[f"w{idx}"] = jax.random.uniform(
            kw, (fan_in, fan_out), jnp.float32, -bound, bound)
        params[f"b{idx}"] = jax.random.uniform(
            kb, (1, fan_out), jnp.float32, -bound, bound)
    return params


def reference_forward(x, p):
    """Pure-JAX reference mirroring the kernel's numerics (bf16 inputs, f32 accum)."""
    to_bf16 = lambda a: a.astype(jnp.bfloat16)
    h1 = jnp.dot(to_bf16(x), to_bf16(p["w1"]), preferred_element_type=jnp.float32)
    h1 = jnp.maximum(h1 + p["b1"], 0.0)
    h2 = jnp.dot(to_bf16(h1), to_bf16(p["w2"]), preferred_element_type=jnp.float32)
    h2 = jnp.maximum(h2 + p["b2"], 0.0)
    out = jnp.dot(to_bf16(h2), to_bf16(p["w3"]), preferred_element_type=jnp.float32)
    return out + p["b3"]


if __name__ == "__main__":
    key = jax.random.PRNGKey(0)
    input_size = 32
    batch = 256
    kx, kp = jax.random.split(key)
    x = jax.random.normal(kx, (batch, input_size), jnp.float32)
    params = init_params(kp, input_size)

    out = jax.block_until_ready(metaphor_nn_forward(x, params))  # grid of 2 steps
    ref = reference_forward(x, params)

    assert out.shape == (batch, OUT)
    assert bool(jnp.allclose(out, ref, atol=2e-2, rtol=2e-2)), "mismatch vs reference"
    print("KERNEL_OK")
</pallas_src>

<mosaic_0001>
module attributes {stable_mosaic.version = 11 : i64} {
  func.func @_mlp_kernel(%arg0: i32, %arg1: memref<128x32xf32, #tpu.memory_space<vmem>>, %arg2: memref<32x128xbf16, #tpu.memory_space<vmem>>, %arg3: memref<1x128xf32, #tpu.memory_space<vmem>>, %arg4: memref<128x64xbf16, #tpu.memory_space<vmem>>, %arg5: memref<1x64xf32, #tpu.memory_space<vmem>>, %arg6: memref<64x2xbf16, #tpu.memory_space<vmem>>, %arg7: memref<1x2xf32, #tpu.memory_space<vmem>>, %arg8: memref<128x2xf32, #tpu.memory_space<vmem>>) attributes {dimension_semantics = [#tpu.dimension_semantics<parallel>], iteration_bounds = array<i64: 2>, scalar_prefetch = 0 : i64, scratch_operands = 0 : i64, tpu.core_type = #tpu.core_type<tc>, window_params = [{transform_indices = @transform_0, window_bounds = array<i64: 128, 32>}, {pipeline_mode = #tpu.pipeline_mode<synchronous>, transform_indices = @transform_1, window_bounds = array<i64: 32, 128>}, {pipeline_mode = #tpu.pipeline_mode<synchronous>, transform_indices = @transform_2, window_bounds = array<i64: 1, 128>}, {pipeline_mode = #tpu.pipeline_mode<synchronous>, transform_indices = @transform_3, window_bounds = array<i64: 128, 64>}, {pipeline_mode = #tpu.pipeline_mode<synchronous>, transform_indices = @transform_4, window_bounds = array<i64: 1, 64>}, {pipeline_mode = #tpu.pipeline_mode<synchronous>, transform_indices = @transform_5, window_bounds = array<i64: 64, 2>}, {pipeline_mode = #tpu.pipeline_mode<synchronous>, transform_indices = @transform_6, window_bounds = array<i64: 1, 2>}, {transform_indices = @transform_7, window_bounds = array<i64: 128, 2>}]} {
    %c0 = arith.constant 0 : index
    %c0_0 = arith.constant 0 : index
    %0 = vector.load %arg1[%c0, %c0_0] : memref<128x32xf32, #tpu.memory_space<vmem>>, vector<128x32xf32>
    %1 = arith.truncf %0 : vector<128x32xf32> to vector<128x32xbf16>
    %c0_1 = arith.constant 0 : index
    %c0_2 = arith.constant 0 : index
    %2 = vector.load %arg2[%c0_1, %c0_2] : memref<32x128xbf16, #tpu.memory_space<vmem>>, vector<32x128xbf16>
    %cst = arith.constant dense<0.000000e+00> : vector<128x128xf32>
    %3 = tpu.matmul %1, %2, %cst {dimension_numbers = #tpu.dot_dimension_numbers<[1], [0], [0], [1], [0, 0, 1, 1], [], []>} : vector<128x32xbf16>, vector<32x128xbf16>, vector<128x128xf32> -> vector<128x128xf32>
    %c0_3 = arith.constant 0 : index
    %c0_4 = arith.constant 0 : index
    %4 = vector.load %arg3[%c0_3, %c0_4] : memref<1x128xf32, #tpu.memory_space<vmem>>, vector<1x128xf32>
    %5 = vector.broadcast %4 : vector<1x128xf32> to vector<128x128xf32>
    %6 = arith.addf %3, %5 : vector<128x128xf32>
    %cst_5 = arith.constant 0.000000e+00 : f32
    %7 = vector.broadcast %cst_5 : f32 to vector<128x128xf32>
    %8 = arith.maximumf %6, %7 : vector<128x128xf32>
    %9 = arith.truncf %8 : vector<128x128xf32> to vector<128x128xbf16>
    %c0_6 = arith.constant 0 : index
    %c0_7 = arith.constant 0 : index
    %10 = vector.load %arg4[%c0_6, %c0_7] : memref<128x64xbf16, #tpu.memory_space<vmem>>, vector<128x64xbf16>
    %cst_8 = arith.constant dense<0.000000e+00> : vector<128x64xf32>
    %11 = tpu.matmul %9, %10, %cst_8 {dimension_numbers = #tpu.dot_dimension_numbers<[1], [0], [0], [1], [0, 0, 1, 1], [], []>} : vector<128x128xbf16>, vector<128x64xbf16>, vector<128x64xf32> -> vector<128x64xf32>
    %c0_9 = arith.constant 0 : index
    %c0_10 = arith.constant 0 : index
    %12 = vector.load %arg5[%c0_9, %c0_10] : memref<1x64xf32, #tpu.memory_space<vmem>>, vector<1x64xf32>
    %13 = vector.broadcast %12 : vector<1x64xf32> to vector<128x64xf32>
    %14 = arith.addf %11, %13 : vector<128x64xf32>
    %cst_11 = arith.constant 0.000000e+00 : f32
    %15 = vector.broadcast %cst_11 : f32 to vector<128x64xf32>
    %16 = arith.maximumf %14, %15 : vector<128x64xf32>
    %17 = arith.truncf %16 : vector<128x64xf32> to vector<128x64xbf16>
    %c0_12 = arith.constant 0 : index
    %c0_13 = arith.constant 0 : index
    %18 = vector.load %arg6[%c0_12, %c0_13] : memref<64x2xbf16, #tpu.memory_space<vmem>>, vector<64x2xbf16>
    %cst_14 = arith.constant dense<0.000000e+00> : vector<128x2xf32>
    %19 = tpu.matmul %17, %18, %cst_14 {dimension_numbers = #tpu.dot_dimension_numbers<[1], [0], [0], [1], [0, 0, 1, 1], [], []>} : vector<128x64xbf16>, vector<64x2xbf16>, vector<128x2xf32> -> vector<128x2xf32>
    %c0_15 = arith.constant 0 : index
    %c0_16 = arith.constant 0 : index
    %20 = vector.load %arg7[%c0_15, %c0_16] : memref<1x2xf32, #tpu.memory_space<vmem>>, vector<1x2xf32>
    %21 = vector.broadcast %20 : vector<1x2xf32> to vector<128x2xf32>
    %22 = arith.addf %19, %21 : vector<128x2xf32>
    %c0_17 = arith.constant 0 : index
    %c0_18 = arith.constant 0 : index
    %23 = vector.load %arg8[%c0_17, %c0_18] : memref<128x2xf32, #tpu.memory_space<vmem>>, vector<128x2xf32>
    tpu.vector_store %arg8[%c0_17, %c0_18], %22 {strides = array<i32>} : memref<128x2xf32, #tpu.memory_space<vmem>>, vector<128x2xf32>,
    return
  }
  func.func @transform_0(%arg0: i32) -> (i32, i32) {
    %c0_i32 = arith.constant 0 : i32
    %c0_i32_0 = arith.constant 0 : i32
    return %arg0, %c0_i32 : i32, i32
  }
  func.func @transform_1(%arg0: i32) -> (i32, i32) {
    %c0_i32 = arith.constant 0 : i32
    %c0_i32_0 = arith.constant 0 : i32
    %c0_i32_1 = arith.constant 0 : i32
    return %c0_i32, %c0_i32_0 : i32, i32
  }
  func.func @transform_2(%arg0: i32) -> (i32, i32) {
    %c0_i32 = arith.constant 0 : i32
    %c0_i32_0 = arith.constant 0 : i32
    %c0_i32_1 = arith.constant 0 : i32
    return %c0_i32, %c0_i32_0 : i32, i32
  }
  func.func @transform_3(%arg0: i32) -> (i32, i32) {
    %c0_i32 = arith.constant 0 : i32
    %c0_i32_0 = arith.constant 0 : i32
    %c0_i32_1 = arith.constant 0 : i32
    return %c0_i32, %c0_i32_0 : i32, i32
  }
  func.func @transform_4(%arg0: i32) -> (i32, i32) {
    %c0_i32 = arith.constant 0 : i32
    %c0_i32_0 = arith.constant 0 : i32
    %c0_i32_1 = arith.constant 0 : i32
    return %c0_i32, %c0_i32_0 : i32, i32
  }
  func.func @transform_5(%arg0: i32) -> (i32, i32) {
    %c0_i32 = arith.constant 0 : i32
    %c0_i32_0 = arith.constant 0 : i32
    %c0_i32_1 = arith.constant 0 : i32
    return %c0_i32, %c0_i32_0 : i32, i32
  }
  func.func @transform_6(%arg0: i32) -> (i32, i32) {
    %c0_i32 = arith.constant 0 : i32
    %c0_i32_0 = arith.constant 0 : i32
    %c0_i32_1 = arith.constant 0 : i32
    return %c0_i32, %c0_i32_0 : i32, i32
  }
  func.func @transform_7(%arg0: i32) -> (i32, i32) {
    %c0_i32 = arith.constant 0 : i32
    %c0_i32_0 = arith.constant 0 : i32
    return %arg0, %c0_i32 : i32, i32
  }
}

</mosaic_0001>

<bundles_post_ra>
// kernel: metaphor_nn_forward.1
= control target key start
LH: loop header
LB: loop body
LE: loop exit
PB: predicated region body
PF: predicated region fallthrough
CT: control target
= control target key end

     0   :  { %12 = vsyncpa [#allocation3], 0  ;;  %s2129_s0 = inlined_call_operand.hbm [shape: f32[256,32], index: 0, kind: input, shape index: {}]   ;;  %s2130_s1 = inlined_call_operand.hbm [shape: bf16[32,128], index: 1, kind: input, shape index: {}]   ;;  %s2131_s2 = inlined_call_operand.hbm [shape: f32[1,128], index: 2, kind: input, shape index: {}]   ;;  %s2132_s3 = inlined_call_operand.hbm [shape: bf16[128,64], index: 3, kind: input, shape index: {}]   ;;  %s2133_s4 = inlined_call_operand.hbm [shape: f32[1,64], index: 4, kind: input, shape index: {}]   ;;  %s2134_s5 = inlined_call_operand.hbm [shape: bf16[64,2], index: 5, kind: input, shape index: {}]   ;;  %s2135_s6 = inlined_call_operand.hbm [shape: f32[1,2], index: 6, kind: input, shape index: {}]   ;;  %s2136_s7 = inlined_call_operand.hbm [shape: f32[256,2], index: 7, kind: output, shape index: {}]  }
   0x1   :  { %14 = vsyncpa [#allocation3 + $0x1], 0 }
   0x2   :  { %15 = vsyncpa [#allocation6], 0 }
   0x3   :  { %16 = vsyncpa [#allocation9], 0 }
   0x4   :  { %17 = vsyncpa [#allocation12], 0 }
   0x5   :  { %18 = vsyncpa [#allocation4], 0 }
   0x6   :  { %20 = vsyncpa [#allocation4 + $0x1], 0  ;;  %s1722_s24 = smov 0   ;;  %s1724_s25 = smov 0  }
   0x7   :  { %s1726_s26 = smov 0   ;;  %s1728_s27 = smov 0  }
   0x8 LB: > { %s1668_s28 = smov [#allocation5]   ;;  %s1743_s30 = sadd.s32 4294967295, %s1666_s27   ;;  %s1666_s27 = sphi %s1728_s27, %s2162_s27   ;;  %s1662_s26 = sphi %s1726_s26, %s2161_s26   ;;  %s1658_s25 = sphi %s1724_s25, %s2160_s25   ;;  %s1654_s24 = sphi %s1722_s24, %s2159_s24  }
   0x9   : > { %s221_s29 = sshll.u32 %s1668_s28, 4  ;;  %p1089_p0 = scmp.ge.s32.totalorder %s1666_s27, 1  ;;  %s1748_s29 = int_to_ptr.vmem [resolvable:$true] %s221_s29 }
   0xa   : > { %p2137_p1 = scmp.eq.s32.totalorder %s1743_s30, 0  ;;  %p209_p2 = scmp.lt.s32.totalorder %s1666_s27, 3 }
   0xb   : > { %s1669_s9 = smov [#allocation8]   ;;  %s1670_s12 = smov [#allocation11]  }
   0xc   : > { %p1750_p3 = pnand %p1089_p0, %p209_p2  ;;  %s245_s10 = sshll.u32 %s1669_s9, 4  ;;  %s1763_s10 = int_to_ptr.vmem [resolvable:$true] %s245_s10 }
   0xd   : > { %s269_s13 = sshll.u32 %s1670_s12, 4  ;;  %s1390_s16 = scalar_lea.hbm %s2130_s1, 256  ;;  %s1765_s13 = int_to_ptr.vmem [resolvable:$true] %s269_s13 }
   0xe   : > { %s2140_s8 = scalar_select %p1750_p3, 1, 0 }
   0xf   : > { %p1291_p5 = pneg %p1750_p3  ;;  %p1391_p7 = scmp.ne.s32.totalorder %s2130_s1, %s1390_s16 }
  0x10   : > { %p1397_p11 = scmp.lt.u32.totalorder %s1390_s16, %s2130_s1 }
  0x11   : > { %p1759_p6 = pnand %p1291_p5, %p2137_p1 }
  0x13   : > { %p1775_p8 = pneg %p1759_p6 }
  0x15   : > { %p1393_p9 = pnand %p1775_p8, %p1391_p7 }
  0x17   : > { %p1394_p10 = pneg %p1393_p9 }
  0x19   : > { %p1399_p12 = pnand %p1397_p11, %p1394_p10 }
  0x1b   : > { %1402 = shalt.err (!%p1399_p12)
}
  0x1c   : > { %s1403_s22 = scalar_lea.vmem %s1748_s29, 256  ;;  %p1411_p5 = scmp.lt.s32.totalorder %s1748_s29, %s1748_s29 }
  0x1d   : > { %p1404_p13 = scmp.ne.s32.totalorder %s1748_s29, %s1403_s22  ;;  %p1412_p4 = scmp.lt.s32.totalorder %s1403_s22, %s1403_s22 }
  0x1f   : > { %p1406_p0 = pnand %p1404_p13, %p1775_p8  ;;  %p1413_p7 = por %p1412_p4, %p1411_p5 }
  0x21   : > { %p1407_p2 = pneg %p1406_p0 }
  0x23   : > { %p1414_p9 = pnand %p1413_p7, %p1407_p2 }
  0x25   : > { %1417 = shalt.err (!%p1414_p9)
}
  0x26   : > { %s1671_s23 = smov 64   ;;  %s1672_s28 = smov 4  }
  0x27   : > { %1294 = dma.hbm_to_vmem [thread:$0]  (!%p1759_p6), %s2130_s1, 256, %s1748_s29, [#allocation6], %s1671_s23, %s1671_s23, %s1672_s28  }
  0x28   : > { %s1418_s16 = scalar_lea.hbm %s2132_s3, 1024 }
  0x29   : > { %p1419_p4 = scmp.ne.s32.totalorder %s2132_s3, %s1418_s16  ;;  %p1425_p12 = scmp.lt.u32.totalorder %s1418_s16, %s2132_s3 }
  0x2b   : > { %p1421_p10 = pnand %p1419_p4, %p1775_p8 }
  0x2d   : > { %p1422_p11 = pneg %p1421_p10 }
  0x2f   : > { %p1427_p13 = pnand %p1425_p12, %p1422_p11 }
  0x31   : > { %1430 = shalt.err (!%p1427_p13)
}
  0x32   : > { %s1431_s29 = scalar_lea.vmem %s1763_s10, 1024  ;;  %p1439_p7 = scmp.lt.s32.totalorder %s1763_s10, %s1763_s10 }
  0x33   : > { %p1432_p0 = scmp.ne.s32.totalorder %s1763_s10, %s1431_s29  ;;  %p1440_p9 = scmp.lt.s32.totalorder %s1431_s29, %s1431_s29 }
  0x35   : > { %p1434_p2 = pnand %p1432_p0, %p1775_p8  ;;  %p1441_p4 = por %p1440_p9, %p1439_p7 }
  0x37   : > { %p1435_p5 = pneg %p1434_p2 }
  0x39   : > { %p1442_p10 = pnand %p1441_p4, %p1435_p5 }
  0x3b   : > { %1445 = shalt.err (!%p1442_p10)
}
  0x3c   : > { %1300 = dma.hbm_to_vmem [thread:$0]  (!%p1759_p6), %s2132_s3, 1024, %s1763_s10, [#allocation9], %s1671_s23, %s1671_s23, %s1672_s28  }
  0x3d   : > { %s1446_s15 = scalar_lea.hbm %s2134_s5, 512 }
  0x3e   : > { %p1447_p11 = scmp.ne.s32.totalorder %s2134_s5, %s1446_s15  ;;  %p1453_p0 = scmp.lt.u32.totalorder %s1446_s15, %s2134_s5 }
  0x40   : > { %p1449_p12 = pnand %p1447_p11, %p1775_p8 }
  0x42   : > { %p1450_p13 = pneg %p1449_p12 }
  0x44   : > { %p1455_p2 = pnand %p1453_p0, %p1450_p13 }
  0x46   : > { %1458 = shalt.err (!%p1455_p2)
}
  0x47   : > { %s1459_s10 = scalar_lea.vmem %s1765_s13, 512  ;;  %p1467_p4 = scmp.lt.s32.totalorder %s1765_s13, %s1765_s13 }
  0x48   : > { %p1460_p5 = scmp.ne.s32.totalorder %s1765_s13, %s1459_s10  ;;  %p1468_p10 = scmp.lt.s32.totalorder %s1459_s10, %s1459_s10 }
  0x4a   : > { %p1462_p7 = pnand %p1460_p5, %p1775_p8  ;;  %p1469_p11 = por %p1468_p10, %p1467_p4 }
  0x4c   : > { %p1463_p9 = pneg %p1462_p7 }
  0x4e   : > { %p1470_p12 = pnand %p1469_p11, %p1463_p9 }
  0x50   : > { %1473 = shalt.err (!%p1470_p12)
}
  0x51   : > { %1306 = dma.hbm_to_vmem [thread:$0]  (!%p1759_p6), %s2134_s5, 512, %s1765_s13, [#allocation12], %s1671_s23, %s1671_s23, %s1672_s28  }
  0x52   : > { %s1673_s22 = smov [#allocation7]   ;;  %s1674_s12 = smov [#allocation10]  }
  0x53   : > { %s235_s9 = sshll.u32 %s1673_s22, 4  ;;  %s259_s14 = sshll.u32 %s1674_s12, 4  ;;  %s236_s9 = int_to_ptr.vmem [resolvable:$true] %s235_s9  ;;  %s260_s14 = int_to_ptr.vmem [resolvable:$true] %s259_s14 }
  0x54   : > { %s1474_s17 = scalar_lea.hbm %s2131_s2, 16 }
  0x55   : > { %p1475_p13 = scmp.ne.s32.totalorder %s2131_s2, %s1474_s17  ;;  %p1481_p5 = scmp.lt.u32.totalorder %s1474_s17, %s2131_s2 }
  0x57   : > { %p1477_p0 = pnand %p1475_p13, %p1775_p8 }
  0x59   : > { %p1478_p2 = pneg %p1477_p0 }
  0x5b   : > { %p1483_p7 = pnand %p1481_p5, %p1478_p2 }
  0x5d   : > { %1486 = shalt.err (!%p1483_p7)
}
  0x5e   : > { %s1487_s13 = scalar_lea.vmem %s236_s9, 16  ;;  %s1494_s23 = scalar_lea.vmem %s236_s9, 32 }
  0x5f   : > { %p1488_p9 = scmp.ne.s32.totalorder %s236_s9, %s1487_s13  ;;  %p1495_p11 = scmp.lt.s32.totalorder %s236_s9, %s236_s9 }
  0x60   : > { %p1496_p12 = scmp.lt.s32.totalorder %s1494_s23, %s1487_s13 }
  0x61   : > { %p1490_p4 = pnand %p1488_p9, %p1775_p8 }
  0x62   : > { %p1497_p1 = por %p1496_p12, %p1495_p11 }
  0x63   : > { %p1491_p10 = pneg %p1490_p4 }
  0x65   : > { %p1498_p3 = pnand %p1497_p1, %p1491_p10 }
  0x67   : > { %1501 = shalt.err (!%p1498_p3)
}
  0x68   : > { %1297 = dma.hbm_to_vmem [thread:$0]  (!%p1759_p6), %s2131_s2, 16, %s236_s9, [#allocation6]  }
  0x69   : > { %s1502_s15 = scalar_lea.hbm %s2133_s4, 16 }
  0x6a   : > { %p1503_p13 = scmp.ne.s32.totalorder %s2133_s4, %s1502_s15  ;;  %p1509_p3 = scmp.lt.u32.totalorder %s1502_s15, %s2133_s4 }
  0x6c   : > { %p1505_p0 = pnand %p1503_p13, %p1775_p8 }
  0x6e   : > { %p1506_p1 = pneg %p1505_p0 }
  0x70   : > { %p1511_p2 = pnand %p1509_p3, %p1506_p1 }
  0x72   : > { %1514 = shalt.err (!%p1511_p2)
}
  0x73   : > { %s1515_s10 = scalar_lea.vmem %s260_s14, 16  ;;  %s1522_s9 = scalar_lea.vmem %s260_s14, 32 }
  0x74   : > { %p1516_p5 = scmp.ne.s32.totalorder %s260_s14, %s1515_s10  ;;  %p1523_p4 = scmp.lt.s32.totalorder %s260_s14, %s260_s14 }
  0x75   : > { %p1524_p10 = scmp.lt.s32.totalorder %s1522_s9, %s1515_s10 }
  0x76   : > { %p1518_p7 = pnand %p1516_p5, %p1775_p8 }
  0x77   : > { %p1525_p11 = por %p1524_p10, %p1523_p4 }
  0x78   : > { %p1519_p9 = pneg %p1518_p7 }
  0x7a   : > { %p1526_p12 = pnand %p1525_p11, %p1519_p9 }
  0x7c   : > { %1529 = shalt.err (!%p1526_p12)
}
  0x7d   : > { %1303 = dma.hbm_to_vmem [thread:$0]  (!%p1759_p6), %s2133_s4, 16, %s260_s14, [#allocation9]  }
  0x7e   : > { %s1675_s23 = smov [#allocation13]   ;;  %s1530_s12 = scalar_lea.hbm %s2135_s6, 16 }
  0x7f   : > { %s283_s28 = sshll.u32 %s1675_s23, 4  ;;  %p1531_p13 = scmp.ne.s32.totalorder %s2135_s6, %s1530_s12  ;;  %s284_s28 = int_to_ptr.vmem [resolvable:$true] %s283_s28 }
  0x80   : > { %p1537_p3 = scmp.lt.u32.totalorder %s1530_s12, %s2135_s6 }
  0x81   : > { %p1533_p0 = pnand %p1531_p13, %p1775_p8 }
  0x83   : > { %p1534_p1 = pneg %p1533_p0 }
  0x85   : > { %p1539_p2 = pnand %p1537_p3, %p1534_p1 }
  0x87   : > { %1542 = shalt.err (!%p1539_p2)
}
  0x88   : > { %s1543_s14 = scalar_lea.vmem %s284_s28, 16  ;;  %s1550_s20 = scalar_lea.vmem %s284_s28, 32 }
  0x89   : > { %p1544_p5 = scmp.ne.s32.totalorder %s284_s28, %s1543_s14  ;;  %p1551_p4 = scmp.lt.s32.totalorder %s284_s28, %s284_s28 }
  0x8a   : > { %p1552_p10 = scmp.lt.s32.totalorder %s1550_s20, %s1543_s14 }
  0x8b   : > { %p1546_p7 = pnand %p1544_p5, %p1775_p8 }
  0x8c   : > { %p1553_p11 = por %p1552_p10, %p1551_p4 }
  0x8d   : > { %p1547_p9 = pneg %p1546_p7 }
  0x8f   : > { %p1554_p12 = pnand %p1553_p11, %p1547_p9 }
  0x91   : > { %1557 = shalt.err (!%p1554_p12)
}
  0x92   : > { %1309 = dma.hbm_to_vmem [thread:$0]  (!%p1759_p6), %s2135_s6, 16, %s284_s28, [#allocation12]  }
  0x93   : > { %s1088_s19 = sadd.s32 4294967294, %s1666_s27   ;;  %s1907_s11 = sadd.s32 1, %s1666_s27  }
  0x94   : > { %s30_s21 = ssub.s32 %s1666_s27, %s1907_s11  ;;  %s33_s13 = sadd.s32 1, %s1662_s26 }
  0x95   : > { %p31_p8 = scmp.eq.s32.totalorder %s30_s21, 0  ;;  %p40_p13 = scmp.ne.s32.totalorder %s1662_s26, %s1658_s25 }
  0x96   : > { %p41_p0 = scmp.eq.s32.totalorder %s1666_s27, 0  ;;  %p46_p1 = scmp.ne.s32.totalorder %s1658_s25, %s1654_s24 }
  0x97   : > { %s1918_s23 = scalar_select %p31_p8, %s1662_s26, %s33_s13  }
  0x98   : > { %p1920_p3 = por %p41_p0, %p40_p13  ;;  %p2144_p2 = scmp.eq.s32.totalorder %s1743_s30, 0 }
  0x99   : > { %p196_p5 = scmp.eq.s32.totalorder %s1743_s30, 1  ;;  %p202_p7 = scmp.eq.s32.totalorder %s1088_s19, 1 }
  0x9a   : > { %p1926_p6 = por %p2144_p2, %p46_p1  ;;  %p1324_p9 = scmp.lt.s32.totalorder %s1666_s27, 2 }
  0x9b   : > { %s294_s22 = sand.u32 1, %s1662_s26   ;;  %p1933_p4 = por %p196_p5, %p40_p13 }
  0x9c   : > { %p1937_p10 = por %p202_p7, %p46_p1  ;;  %s1097_s16 = sshll.u32 %s294_s22, 7 }
  0x9d   : > { %s2146_s12 = scalar_select %p1933_p4, 1, 0 }
  0x9e   : > { %s2147_s15 = scalar_select %p1937_p10, 1, 0 }
  0x9f   : > { %s1147_s17 = sshll.u32 %s1666_s27, 11  ;;  %s298_s10 = scalar_lea.vmem [#allocation2], %s1097_s16 }
  0xa0   : > { %s1945_s20 = scalar_lea.hbm %s2129_s0, %s1147_s17  ;;  %s305_s9 = sshll.u32 %s298_s10, 4  ;;  %s1947_s9 = int_to_ptr.vmem [resolvable:$true] %s305_s9 }
  0xa1   : > { %p1951_p11 = pnand %p1324_p9, %p1920_p3  ;;  %s1955_s21 = scalar_lea.sflag [#allocation3], %s294_s22 }
  0xa2   : > { %s1558_s13 = scalar_lea.hbm %s1945_s20, 2048  ;;  %s1563_s29 = scalar_lea.hbm %s2129_s0, 4096 }
  0xa3   : > { %p1559_p12 = scmp.ne.s32.totalorder %s1945_s20, %s1558_s13  ;;  %p1560_p8 = pneg %p1951_p11 }
  0xa4   : > { %p1564_p1 = scmp.lt.u32.totalorder %s1945_s20, %s2129_s0  ;;  %p1565_p3 = scmp.lt.u32.totalorder %s1563_s29, %s1558_s13 }
  0xa5   : > { %p1561_p13 = pnand %p1560_p8, %p1559_p12  ;;  %p1567_p5 = scmp.lt.u32.totalorder %s1558_s13, %s1945_s20 }
  0xa6   : > { %p1566_p2 = por %p1565_p3, %p1564_p1 }
  0xa7   : > { %p1562_p0 = pneg %p1561_p13 }
  0xa8   : > { %p1568_p7 = por %p1567_p5, %p1566_p2 }
  0xaa   : > { %p1569_p9 = pnand %p1568_p7, %p1562_p0 }
  0xac   : > { %1572 = shalt.err (!%p1569_p9)
}
  0xad   : > { %s1573_s22 = scalar_lea.vmem %s1947_s9, 2048  ;;  %s1676_s10 = smov [#allocation2]  }
  0xae   : > { %p1574_p12 = scmp.ne.s32.totalorder %s1947_s9, %s1573_s22  ;;  %s1578_s16 = sshll.u32 %s1676_s10, 4  ;;  %s1579_s16 = int_to_ptr.vmem [resolvable:$false] %s1578_s16 }
  0xaf   : > { %s1580_s17 = scalar_lea.vmem %s1579_s16, 4096  ;;  %p1581_p4 = scmp.lt.s32.totalorder %s1947_s9, %s1579_s16 }
  0xb0   : > { %p1576_p13 = pnand %p1574_p12, %p1560_p8  ;;  %p1582_p1 = scmp.lt.s32.totalorder %s1580_s17, %s1573_s22 }
  0xb2   : > { %p1577_p10 = pneg %p1576_p13  ;;  %p1583_p3 = por %p1582_p1, %p1581_p4 }
  0xb4   : > { %p1584_p2 = pnand %p1583_p3, %p1577_p10 }
  0xb6   : > { %1587 = shalt.err (!%p1584_p2)
}
  0xb7   : > { %s1677_s13 = smov 128   ;;  %s1678_s29 = smov 8  }
  0xb8   : > { %1313 = dma.hbm_to_vmem [thread:$0]  (!%p1951_p11), %s1945_s20, 2048, %s1947_s9, %s1955_s21, %s1677_s13, %s1677_s13, %s1678_s29  }
  0xb9   : > { %p2149_p8 = scmp.ne.s32.totalorder %s2140_s8, 0 }
  0xba   : > { %s1986_s18 = sand.u32 (!%p2149_p8), 1, %s1658_s25  }
  0xbb   : > { %317 = sbr.rel (%p2149_p8) target bundleno = 914 (0x392), region = 48  ;;  %s1101_s14 = sshll.u32 (!%p2149_p8), %s1986_s18, 7 }
  0xbc   : > { %s320_s22 = scalar_lea.sflag (!%p2149_p8), [#allocation3], %s1986_s18  ;;  %s1992_s10 = scalar_lea.vmem (!%p2149_p8), [#allocation2], %s1101_s14 }
  0xc2   : > { %1633 = dma.done.wait (%p1926_p6), %s320_s22, 2048  }
  0xc3   : > { %1635 = vsyncadd (%p1926_p6), %s320_s22, 4294965248  ;;  %p2150_p4 = scmp.eq.s32.totalorder %s1743_s30, 0 }
  0xc5   : > { %1637 = dma.done.wait (%p2150_p4), [#allocation6], 272   ;;  %p2151_p10 = pmov %p2150_p4 }
  0xc6   : > { %p2152_p11 = pmov %p2150_p4 }
  0xc7   : > { %1639 = vsyncadd (%p2151_p10), [#allocation6], 4294967024 }
  0xc8   : > { %1641 = dma.done.wait (%p2152_p11), [#allocation9], 1040   ;;  %p2153_p0 = pmov %p2150_p4 }
  0xca   : > { %1643 = vsyncadd (%p2153_p0), [#allocation9], 4294966256  ;;  %p2154_p5 = pmov %p2153_p0 }
  0xcb   : > { %p2155_p7 = pmov %p2153_p0 }
  0xcc   : > { %1645 = dma.done.wait (%p2154_p5), [#allocation12], 528  }
  0xcd   : > { %1647 = vsyncadd (%p2155_p7), [#allocation12], 4294966768  ;;  %v1376_v0 = vld [vmem:[#allocation5] sm:$0xff]   ;;  %v1377_v1 = vld [vmem:[#allocation5 + $0x8] sm:$0xff]   ;;  %vm428_vm0 = vcmask 261120   ;;  %vm805_vm1 = vcmask 523264  }
  0xce   : > { %1187 = vmatprep.subr.bf16.mxu0 %v1376_v0  ;;  %v381_v2 = vld [vmem:[%s1992_s10] sm:$0xff]  ;;  %v382_v3 = vld [vmem:[%s1992_s10 + $0x8] sm:$0xff]  ;;  %v383_v5 = vld [vmem:[%s1992_s10 + $0x10] sm:$0xff]  ;;  %vm927_vm2 = vcmask 15360   ;;  %s2044_s8 = scalar_lea.vmem [#allocation14], %s1101_s14  ;;  %s1148_s28 = sshll.u32 %s1743_s30, 11 }
  0xcf   : > { %1188 = vmatpush3.bf16.msra.mxu0 %v1376_v0  ;;  %v397_v4 = vpack.c.bf16 %v382_v3, %v381_v2  ;;  %v384_v6 = vld [vmem:[%s1992_s10 + $0x18] sm:$0xff]  ;;  %v385_v7 = vld [vmem:[%s1992_s10 + $0x20] sm:$0xff]  ;;  %v386_v8 = vld [vmem:[%s1992_s10 + $0x28] sm:$0xff]  ;;  %s958_s20 = sshll.u32 %s2044_s8, 4  ;;  %s2077_s21 = scalar_lea.hbm %s2136_s7, %s1148_s28  ;;  %s2079_s20 = int_to_ptr.vmem [resolvable:$true] %s958_s20 }
  0xd0   : > { %1189 = vmatprep.subr.bf16.mxu0 %v1377_v1  ;;  %v398_v9 = vpack.c.bf16 %v384_v6, %v383_v5  ;;  %v399_v10 = vpack.c.bf16 %v386_v8, %v385_v7  ;;  %v1378_v11 = vld [vmem:[#allocation8] sm:$0xff]   ;;  %v1379_v14 = vld [vmem:[#allocation8 + $0x8] sm:$0xff]   ;;  %v390_v16 = vld [vmem:[%s1992_s10 + $0x48] sm:$0xff]  ;;  %s945_s30 = scalar_lea.sflag [#allocation4], %s1986_s18  ;;  %s1588_s16 = scalar_lea.vmem %s2079_s20, 2048 }
  0xd1   : > { %1191 = vmatprep.mubr.msk.bf16.mxu0 %vm428_vm0, %v397_v4  ;;  %v387_v12 = vld [vmem:[%s1992_s10 + $0x30] sm:$0xff]  ;;  %v388_v13 = vld [vmem:[%s1992_s10 + $0x38] sm:$0xff]  ;;  %v389_v15 = vld [vmem:[%s1992_s10 + $0x40] sm:$0xff]  ;;  %1207 = vmatprep.subr.bf16.mxu1 %v1378_v11  ;;  %p1589_p6 = scmp.ne.s32.totalorder %s2079_s20, %s1588_s16  ;;  %p2156_p9 = scmp.ne.s32.totalorder %s2146_s12, 0 }
  0xd2   : > { %1208 = vmatpush3.bf16.msra.mxu1 %v1378_v11  ;;  %v1380_v17 = vld [vmem:[#allocation8 + $0x10] sm:$0xff]   ;;  %v400_v18 = vpack.c.bf16 %v388_v13, %v387_v12  ;;  %v1381_v19 = vld [vmem:[#allocation8 + $0x18] sm:$0xff]   ;;  %v401_v20 = vpack.c.bf16 %v390_v16, %v389_v15  ;;  %v392_v22 = vld [vmem:[%s1992_s10 + $0x58] sm:$0xff]  ;;  %s1679_s17 = smov [#allocation14]  }
  0xd3   : > { %1190 = vmatpush3.bf16.msra.mxu0 %v1377_v1  ;;  %1209 = vmatprep.subr.bf16.mxu1 %v1379_v14  ;;  %v391_v21 = vld [vmem:[%s1992_s10 + $0x50] sm:$0xff]  ;;  %v393_v23 = vld [vmem:[%s1992_s10 + $0x60] sm:$0xff]  ;;  %v394_v24 = vld [vmem:[%s1992_s10 + $0x68] sm:$0xff]  ;;  %p1590_p12 = pnand %p1589_p6, %p2156_p9  ;;  %s1592_s13 = sshll.u32 %s1679_s17, 4  ;;  %s1593_s13 = int_to_ptr.vmem [resolvable:$false] %s1592_s13 }
  0xd4   : > { %v1382_v25 = vld [vmem:[#allocation8 + $0x20] sm:$0xff]   ;;  %v402_v26 = vpack.c.bf16 %v392_v22, %v391_v21  ;;  %v403_v27 = vpack.c.bf16 %v394_v24, %v393_v23  ;;  %v1383_v28 = vld [vmem:[#allocation8 + $0x28] sm:$0xff]   ;;  %v1384_v32 = vld [vmem:[#allocation8 + $0x30] sm:$0xff]   ;;  %s1594_s29 = scalar_lea.vmem %s1593_s13, 4096  ;;  %p1595_p1 = scmp.lt.s32.totalorder %s2079_s20, %s1593_s13 }
  0xd5   : > { %v395_v29 = vld [vmem:[%s1992_s10 + $0x70] sm:$0xff]  ;;  %v396_v30 = vld [vmem:[%s1992_s10 + $0x78] sm:$0xff]  ;;  %v1388_v36 = vld [vmem:[#allocation11 + $0x10] sm:$0xff]   ;;  %p1591_p13 = pneg %p1590_p12  ;;  %p1596_p3 = scmp.lt.s32.totalorder %s1594_s29, %s1588_s16 }
  0xd6   : > { %1192 = vmatmul.mubr.msk.bf16.vlgmr.msra.gmra.mrb[0].mxu0 %vm428_vm0, %v398_v9  ;;  %1210 = vmatpush3.bf16.msra.mxu1 %v1379_v14  ;;  %v404_v31 = vpack.c.bf16 %v396_v30, %v395_v29  ;;  %v1385_v33 = vld [vmem:[#allocation8 + $0x38] sm:$0xff]   ;;  %v1386_v34 = vld [vmem:[#allocation11] sm:$0xff]   ;;  %v1387_v35 = vld [vmem:[#allocation11 + $0x8] sm:$0xff]  }
  0xd7   : > { %1195 = vmatprep.mubr.msk.bf16.mxu0 %vm428_vm0, %v399_v10  ;;  %1211 = vmatprep.subr.bf16.mxu1 %v1380_v17  ;;  %v1109_v37 = vld [vmem:[#allocation7] ss:$0 sm:$0xff]  ;;  %p1597_p2 = por %p1596_p3, %p1595_p1 }
  0xd8   : > { %1239 = vmatprep.subr.bf16.mxu0 %v1386_v34  ;;  %v1389_v30 = vld [vmem:[#allocation11 + $0x18] sm:$0xff]  }
  0xd9   : > { %1240 = vmatpush3.bf16.msra.mxu0 %v1386_v34  ;;  %p1598_p8 = pnand %p1597_p2, %p1591_p13 }
  0xda   : > { %1212 = vmatpush3.bf16.msra.mxu1 %v1380_v17  ;;  %1241 = vmatprep.subr.bf16.mxu0 %v1387_v35 }
  0xdb   : > { %1213 = vmatprep.subr.bf16.mxu1 %v1381_v19 }
  0xdd   : > { %1242 = vmatpush3.bf16.msra.mxu0 %v1387_v35 }
  0xde   : > { %1196 = vmatmul.mubr.msk.bf16.gmra.mrb[4].mxu0 %vm428_vm0, %v400_v18  ;;  %1214 = vmatpush3.bf16.msra.mxu1 %v1381_v19 }
  0xdf   : > { %1199 = vmatprep.mubr.msk.bf16.mxu0 %vm428_vm0, %v401_v20  ;;  %1215 = vmatprep.subr.bf16.mxu1 %v1382_v25 }
  0xe0   : > { %1243 = vmatprep.subr.bf16.mxu0 %v1388_v36 }
  0xe1   : > { %1244 = vmatpush3.bf16.msra.mxu0 %v1388_v36 }
  0xe2   : > { %1216 = vmatpush3.bf16.msra.mxu1 %v1382_v25  ;;  %1245 = vmatprep.subr.bf16.mxu0 %v1389_v30 }
  0xe3   : > { %1217 = vmatprep.subr.bf16.mxu1 %v1383_v28 }
  0xe5   : > { %1246 = vmatpush3.bf16.msra.mxu0 %v1389_v30 }
  0xe6   : > { %1200 = vmatmul.mubr.msk.bf16.gmra.mrb[8].mxu0 %vm428_vm0, %v402_v26  ;;  %1218 = vmatpush3.bf16.msra.mxu1 %v1383_v28 }
  0xe7   : > { %1203 = vmatprep.mubr.msk.bf16.mxu0 %vm428_vm0, %v403_v27  ;;  %1219 = vmatprep.subr.bf16.mxu1 %v1384_v32 }
  0xea   : > { %1220 = vmatpush3.bf16.msra.mxu1 %v1384_v32 }
  0xeb   : > { %1221 = vmatprep.subr.bf16.mxu1 %v1385_v33 }
  0xee   : > { %1204 = vmatmul.mubr.msk.bf16.gmra.mrb[12].mxu0 %vm428_vm0, %v404_v31  ;;  %1222 = vmatpush3.bf16.msra.mxu1 %v1385_v33  ;;  %v1120_v31 = vld [vmem:[#allocation10] ss:$0 sm:$0xff] }
 0x1a9   : > { %v1193_v38 = vpop.f32.mrb[0].mxu0 }
 0x1aa   : > { %v496_v39 = vadd.f32 %v1193_v38, %v1109_v37  ;;  %v487_v40 = vpop.f32.mrb[1].mxu0 }
 0x1ab   : > { %v488_v41 = vadd.f32 %v1109_v37, %v487_v40  ;;  %v1194_v42 = vpop.f32.mrb[2].mxu0 }
 0x1ac   : > { %v499_v43 = vadd.f32 %v1194_v42, %v1109_v37  ;;  %v490_v44 = vpop.f32.mrb[3].mxu0  ;;  %v552_v46 = vmax.f32 %v496_v39, 0.0 }
 0x1ad   : > { %v491_v45 = vadd.f32 %v1109_v37, %v490_v44  ;;  %v550_v48 = vmax.f32 %v488_v41, 0.0 }
 0x1ae   : > { %v553_v47 = vmax.f32 %v499_v43, 0.0 }
 0x1af   : > { %v551_v49 = vmax.f32 %v491_v45, 0.0 }
 0x1b0   : > { %v567_v50 = vpack.c.bf16 %v553_v47, %v552_v46 }
 0x1b1   : > { %v1197_v51 = vpop.f32.mrb[4].mxu0  ;;  %v566_v52 = vpack.c.bf16 %v551_v49, %v550_v48 }
 0x1b2   : > { %v512_v53 = vadd.f32 %v1197_v51, %v1109_v37  ;;  %v503_v54 = vpop.f32.mrb[5].mxu0 }
 0x1b3   : > { %v504_v55 = vadd.f32 %v1109_v37, %v503_v54  ;;  %v1198_v56 = vpop.f32.mrb[6].mxu0  ;;  %1223 = vmatprep.mubr.bf16.mxu1 %v566_v52 }
 0x1b4   : > { %v515_v57 = vadd.f32 %v1198_v56, %v1109_v37  ;;  %v506_v58 = vpop.f32.mrb[7].mxu0  ;;  %1224 = vmatmul.mubr.bf16.vlgmr.msra.gmra.mrb[0].mxu1 %v567_v50  ;;  %v556_v60 = vmax.f32 %v512_v53, 0.0 }
 0x1b5   : > { %v507_v59 = vadd.f32 %v1109_v37, %v506_v58  ;;  %v554_v62 = vmax.f32 %v504_v55, 0.0 }
 0x1b6   : > { %v557_v61 = vmax.f32 %v515_v57, 0.0 }
 0x1b7   : > { %v555_v63 = vmax.f32 %v507_v59, 0.0 }
 0x1b8   : > { %v569_v0 = vpack.c.bf16 %v557_v61, %v556_v60 }
 0x1b9   : > { %v568_v1 = vpack.c.bf16 %v555_v63, %v554_v62  ;;  %v1201_v2 = vpop.f32.mrb[8].mxu0 }
 0x1ba   : > { %v528_v3 = vadd.f32 %v1201_v2, %v1109_v37  ;;  %v519_v4 = vpop.f32.mrb[9].mxu0 }
 0x1bb   : > { %v520_v5 = vadd.f32 %v1109_v37, %v519_v4  ;;  %v1202_v6 = vpop.f32.mrb[10].mxu0  ;;  %1227 = vmatprep.mubr.bf16.mxu1 %v568_v1 }
 0x1bc   : > { %v531_v7 = vadd.f32 %v1202_v6, %v1109_v37  ;;  %v522_v8 = vpop.f32.mrb[11].mxu0  ;;  %1228 = vmatmul.mubr.bf16.gmra.mrb[4].mxu1 %v569_v0  ;;  %v560_v10 = vmax.f32 %v528_v3, 0.0 }
 0x1bd   : > { %v523_v9 = vadd.f32 %v1109_v37, %v522_v8  ;;  %v558_v12 = vmax.f32 %v520_v5, 0.0 }
 0x1be   : > { %v561_v11 = vmax.f32 %v531_v7, 0.0 }
 0x1bf   : > { %v559_v13 = vmax.f32 %v523_v9, 0.0 }
 0x1c0   : > { %v571_v14 = vpack.c.bf16 %v561_v11, %v560_v10 }
 0x1c1   : > { %v570_v15 = vpack.c.bf16 %v559_v13, %v558_v12  ;;  %v1205_v16 = vpop.f32.mrb[12].mxu0 }
 0x1c2   : > { %v544_v17 = vadd.f32 %v1205_v16, %v1109_v37  ;;  %v535_v18 = vpop.f32.mrb[13].mxu0 }
 0x1c3   : > { %v536_v19 = vadd.f32 %v1109_v37, %v535_v18  ;;  %v1206_v20 = vpop.f32.mrb[14].mxu0  ;;  %1231 = vmatprep.mubr.bf16.mxu1 %v570_v15 }
 0x1c4   : > { %v547_v21 = vadd.f32 %v1206_v20, %v1109_v37  ;;  %v538_v22 = vpop.f32.mrb[15].mxu0  ;;  %1232 = vmatmul.mubr.bf16.gmra.mrb[8].mxu1 %v571_v14  ;;  %v564_v24 = vmax.f32 %v544_v17, 0.0 }
 0x1c5   : > { %v539_v23 = vadd.f32 %v1109_v37, %v538_v22  ;;  %v562_v26 = vmax.f32 %v536_v19, 0.0 }
 0x1c6   : > { %v565_v25 = vmax.f32 %v547_v21, 0.0 }
 0x1c7   : > { %v563_v27 = vmax.f32 %v539_v23, 0.0 }
 0x1c8   : > { %v573_v28 = vpack.c.bf16 %v565_v25, %v564_v24  ;;  %v1129_v24 = vld [vmem:[#allocation13] ss:$0 sm:$0xff] }
 0x1c9   : > { %v572_v29 = vpack.c.bf16 %v563_v27, %v562_v26 }
 0x1cb   : > { %1235 = vmatprep.mubr.bf16.mxu1 %v572_v29 }
 0x1cc   : > { %1236 = vmatmul.mubr.bf16.gmra.mrb[12].mxu1 %v573_v28 }
 0x287   : > { %v1225_v32 = vpop.f32.mrb[0].mxu1 }
 0x288   : > { %v688_v33 = vadd.f32 %v1225_v32, %v1120_v31  ;;  %v679_v34 = vpop.f32.mrb[1].mxu1 }
 0x289   : > { %v680_v35 = vadd.f32 %v1120_v31, %v679_v34  ;;  %v1226_v36 = vpop.f32.mrb[2].mxu1 }
 0x28a   : > { %v691_v38 = vadd.f32 %v1226_v36, %v1120_v31  ;;  %v682_v39 = vpop.f32.mrb[3].mxu1  ;;  %v744_v40 = vmax.f32 %v688_v33, 0.0 }
 0x28b   : > { %v683_v37 = vadd.f32 %v1120_v31, %v682_v39  ;;  %v742_v42 = vmax.f32 %v680_v35, 0.0 }
 0x28c   : > { %v745_v41 = vmax.f32 %v691_v38, 0.0 }
 0x28d   : > { %v743_v43 = vmax.f32 %v683_v37, 0.0 }
 0x28e   : > { %v759_v44 = vpack.c.bf16 %v745_v41, %v744_v40 }
 0x28f   : > { %v758_v45 = vpack.c.bf16 %v743_v43, %v742_v42  ;;  %v1229_v46 = vpop.f32.mrb[4].mxu1 }
 0x290   : > { %v704_v47 = vadd.f32 %v1229_v46, %v1120_v31  ;;  %v695_v48 = vpop.f32.mrb[5].mxu1 }
 0x291   : > { %v696_v49 = vadd.f32 %v1120_v31, %v695_v48  ;;  %v1230_v50 = vpop.f32.mrb[6].mxu1  ;;  %1247 = vmatprep.mubr.msk.bf16.mxu0 %vm805_vm1, %v758_v45 }
 0x292   : > { %v707_v51 = vadd.f32 %v1230_v50, %v1120_v31  ;;  %v698_v52 = vpop.f32.mrb[7].mxu1  ;;  %1248 = vmatmul.mubr.msk.bf16.vlgmr.msra.gmra.mrb[16].mxu0 %vm805_vm1, %v759_v44  ;;  %v748_v54 = vmax.f32 %v704_v47, 0.0 }
 0x293   : > { %v699_v53 = vadd.f32 %v1120_v31, %v698_v52  ;;  %v746_v56 = vmax.f32 %v696_v49, 0.0 }
 0x294   : > { %v749_v55 = vmax.f32 %v707_v51, 0.0 }
 0x295   : > { %v747_v57 = vmax.f32 %v699_v53, 0.0 }
 0x296   : > { %v761_v58 = vpack.c.bf16 %v749_v55, %v748_v54 }
 0x297   : > { %v760_v59 = vpack.c.bf16 %v747_v57, %v746_v56  ;;  %v1233_v60 = vpop.f32.mrb[8].mxu1 }
 0x298   : > { %v720_v61 = vadd.f32 %v1233_v60, %v1120_v31  ;;  %v711_v62 = vpop.f32.mrb[9].mxu1 }
 0x299   : > { %v712_v63 = vadd.f32 %v1120_v31, %v711_v62  ;;  %v1234_v0 = vpop.f32.mrb[10].mxu1  ;;  %1251 = vmatprep.mubr.msk.bf16.mxu0 %vm805_vm1, %v760_v59 }
 0x29a   : > { %v723_v1 = vadd.f32 %v1234_v0, %v1120_v31  ;;  %v714_v2 = vpop.f32.mrb[11].mxu1  ;;  %1252 = vmatmul.mubr.msk.bf16.gmra.mrb[20].mxu0 %vm805_vm1, %v761_v58  ;;  %v752_v4 = vmax.f32 %v720_v61, 0.0 }
 0x29b   : > { %v715_v3 = vadd.f32 %v1120_v31, %v714_v2  ;;  %v750_v6 = vmax.f32 %v712_v63, 0.0 }
 0x29c   : > { %v753_v5 = vmax.f32 %v723_v1, 0.0 }
 0x29d   : > { %v751_v7 = vmax.f32 %v715_v3, 0.0 }
 0x29e   : > { %v763_v8 = vpack.c.bf16 %v753_v5, %v752_v4 }
 0x29f   : > { %v762_v9 = vpack.c.bf16 %v751_v7, %v750_v6  ;;  %v1237_v10 = vpop.f32.mrb[12].mxu1 }
 0x2a0   : > { %v736_v11 = vadd.f32 %v1237_v10, %v1120_v31  ;;  %v727_v12 = vpop.f32.mrb[13].mxu1 }
 0x2a1   : > { %v728_v13 = vadd.f32 %v1120_v31, %v727_v12  ;;  %v1238_v14 = vpop.f32.mrb[14].mxu1  ;;  %1255 = vmatprep.mubr.msk.bf16.mxu0 %vm805_vm1, %v762_v9 }
 0x2a2   : > { %v739_v15 = vadd.f32 %v1238_v14, %v1120_v31  ;;  %v730_v16 = vpop.f32.mrb[15].mxu1  ;;  %1256 = vmatmul.mubr.msk.bf16.gmra.mrb[24].mxu0 %vm805_vm1, %v763_v8  ;;  %v756_v18 = vmax.f32 %v736_v11, 0.0 }
 0x2a3   : > { %v731_v17 = vadd.f32 %v1120_v31, %v730_v16  ;;  %v754_v20 = vmax.f32 %v728_v13, 0.0 }
 0x2a4   : > { %v757_v19 = vmax.f32 %v739_v15, 0.0 }
 0x2a5   : > { %v755_v21 = vmax.f32 %v731_v17, 0.0 }
 0x2a6   : > { %v765_v22 = vpack.c.bf16 %v757_v19, %v756_v18 }
 0x2a7   : > { %v764_v23 = vpack.c.bf16 %v755_v21, %v754_v20 }
 0x2a9   : > { %1259 = vmatprep.mubr.msk.bf16.mxu0 %vm805_vm1, %v764_v23 }
 0x2aa   : > { %1260 = vmatmul.mubr.msk.bf16.gmra.mrb[28].mxu0 %vm805_vm1, %v765_v22 }
 0x365   : > { %v1249_v25 = vpop.f32.mrb[16].mxu0 }
 0x366   : > { %v873_v26 = vadd.f32 %v1249_v25, %v1129_v24  ;;  %v864_v27 = vpop.f32.mrb[17].mxu0 }
 0x367   : > { %v865_v28 = vadd.f32 %v1129_v24, %v864_v27  ;;  %v1250_v29 = vpop.f32.mrb[18].mxu0 }
 0x368   : > { %930 = vst.msk [vmem:[%s2044_s8 + $0x10] sm:$0xff] %vm927_vm2, %v873_v26  ;;  %v876_v30 = vadd.f32 %v1250_v29, %v1129_v24  ;;  %v867_v31 = vpop.f32.mrb[19].mxu0 }
 0x369   : > { %928 = vst.msk [vmem:[%s2044_s8] sm:$0xff] %vm927_vm2, %v865_v28  ;;  %v868_v32 = vadd.f32 %v1129_v24, %v867_v31 }
 0x36a   : > { %931 = vst.msk [vmem:[%s2044_s8 + $0x18] sm:$0xff] %vm927_vm2, %v876_v30 }
 0x36b   : > { %929 = vst.msk [vmem:[%s2044_s8 + $0x8] sm:$0xff] %vm927_vm2, %v868_v32 }
 0x36d   : > { %v1253_v33 = vpop.f32.mrb[20].mxu0 }
 0x36e   : > { %v889_v34 = vadd.f32 %v1253_v33, %v1129_v24  ;;  %v880_v35 = vpop.f32.mrb[21].mxu0 }
 0x36f   : > { %v881_v36 = vadd.f32 %v1129_v24, %v880_v35  ;;  %v1254_v38 = vpop.f32.mrb[22].mxu0 }
 0x370   : > { %934 = vst.msk [vmem:[%s2044_s8 + $0x30] sm:$0xff] %vm927_vm2, %v889_v34  ;;  %v892_v39 = vadd.f32 %v1254_v38, %v1129_v24  ;;  %v883_v37 = vpop.f32.mrb[23].mxu0 }
 0x371   : > { %932 = vst.msk [vmem:[%s2044_s8 + $0x20] sm:$0xff] %vm927_vm2, %v881_v36  ;;  %v884_v40 = vadd.f32 %v1129_v24, %v883_v37 }
 0x372   : > { %935 = vst.msk [vmem:[%s2044_s8 + $0x38] sm:$0xff] %vm927_vm2, %v892_v39 }
 0x373   : > { %933 = vst.msk [vmem:[%s2044_s8 + $0x28] sm:$0xff] %vm927_vm2, %v884_v40 }
 0x375   : > { %v1257_v41 = vpop.f32.mrb[24].mxu0 }
 0x376   : > { %v905_v42 = vadd.f32 %v1257_v41, %v1129_v24  ;;  %v896_v43 = vpop.f32.mrb[25].mxu0 }
 0x377   : > { %v897_v44 = vadd.f32 %v1129_v24, %v896_v43  ;;  %v1258_v45 = vpop.f32.mrb[26].mxu0 }
 0x378   : > { %938 = vst.msk [vmem:[%s2044_s8 + $0x50] sm:$0xff] %vm927_vm2, %v905_v42  ;;  %v908_v46 = vadd.f32 %v1258_v45, %v1129_v24  ;;  %v899_v47 = vpop.f32.mrb[27].mxu0 }
 0x379   : > { %936 = vst.msk [vmem:[%s2044_s8 + $0x40] sm:$0xff] %vm927_vm2, %v897_v44  ;;  %v900_v48 = vadd.f32 %v1129_v24, %v899_v47 }
 0x37a   : > { %939 = vst.msk [vmem:[%s2044_s8 + $0x58] sm:$0xff] %vm927_vm2, %v908_v46 }
 0x37b   : > { %937 = vst.msk [vmem:[%s2044_s8 + $0x48] sm:$0xff] %vm927_vm2, %v900_v48 }
 0x37d   : > { %v1261_v49 = vpop.f32.mrb[28].mxu0 }
 0x37e   : > { %v921_v50 = vadd.f32 %v1261_v49, %v1129_v24  ;;  %v912_v51 = vpop.f32.mrb[29].mxu0 }
 0x37f   : > { %v913_v52 = vadd.f32 %v1129_v24, %v912_v51  ;;  %v1262_v53 = vpop.f32.mrb[30].mxu0 }
 0x380   : > { %942 = vst.msk [vmem:[%s2044_s8 + $0x70] sm:$0xff] %vm927_vm2, %v921_v50  ;;  %v924_v54 = vadd.f32 %v1262_v53, %v1129_v24  ;;  %v915_v55 = vpop.f32.mrb[31].mxu0 }
 0x381   : > { %940 = vst.msk [vmem:[%s2044_s8 + $0x60] sm:$0xff] %vm927_vm2, %v913_v52  ;;  %v916_v56 = vadd.f32 %v1129_v24, %v915_v55 }
 0x382   : > { %943 = vst.msk [vmem:[%s2044_s8 + $0x78] sm:$0xff] %vm927_vm2, %v924_v54 }
 0x383   : > { %941 = vst.msk [vmem:[%s2044_s8 + $0x68] sm:$0xff] %vm927_vm2, %v916_v56 }
 0x384   : > { %1601 = shalt.err (!%p1598_p8)
}
 0x385   : > { %s1602_s14 = scalar_lea.hbm %s2077_s21, 2048  ;;  %s1606_s8 = scalar_lea.hbm %s2136_s7, 4096 }
 0x386   : > { %p1603_p4 = scmp.ne.s32.totalorder %s2077_s21, %s1602_s14  ;;  %p1607_p0 = scmp.lt.u32.totalorder %s2077_s21, %s2136_s7 }
 0x387   : > { %p1608_p5 = scmp.lt.u32.totalorder %s1606_s8, %s1602_s14  ;;  %p1610_p6 = scmp.lt.u32.totalorder %s1602_s14, %s2077_s21 }
 0x388   : > { %p1604_p10 = pnand %p1603_p4, %p2156_p9 }
 0x389   : > { %p1609_p7 = por %p1608_p5, %p1607_p0 }
 0x38a   : > { %p1605_p11 = pneg %p1604_p10 }
 0x38b   : > { %p1611_p12 = por %p1610_p6, %p1609_p7 }
 0x38d   : > { %p1612_p13 = pnand %p1611_p12, %p1605_p11 }
 0x38f   : > { %1615 = shalt.err (!%p1612_p13)
}
 0x390   : > { %s1680_s19 = smov 128   ;;  %s1681_s16 = smov 8  }
 0x391   : > { %1289 = dma.vmem_to_hbm [thread:$0]  (%p2156_p9), %s2079_s20, 2048, %s2077_s21, %s945_s30, %s1680_s19, %s1680_s19, %s1681_s16  }
 0x392 PF: > { %s973_s17 = sand.u32 1, %s1654_s24   ;;  %p2157_p1 = scmp.ne.s32.totalorder %s2147_s15, 0 }
 0x393   : > { %p2158_p3 = scmp.ge.s32.totalorder %s1666_s27, 2  ;;  %s974_s13 = scalar_lea.sflag [#allocation4], %s973_s17 }
 0x395   : > { %p1315_p2 = pnand %p2158_p3, %p2157_p1 }
 0x397   : > { %1649 = dma.done.wait (!%p1315_p2), %s974_s13, 2048  }
 0x398   : > { %1651 = vsyncadd (!%p1315_p2), %s974_s13, 4294965248  ;;  %p23_p8 = scmp.ge.s32.totalorder %s1907_s11, 4   ;;  %s2159_s24 = smov %s1658_s25 }
 0x399   : > { %s2160_s25 = smov %s1662_s26  ;;  %s2161_s26 = smov %s1918_s23 }
 0x39a   : > { %s2162_s27 = smov %s1907_s11  ;;  %25 = sbr.rel (!%p23_p8) target bundleno = 8 (0x8), region = 117 }
 0x3a1   :  { %979 = vsyncpa [#allocation3], 1 }
 0x3a2   :  { %981 = vsyncpa [#allocation3 + $0x1], 1 }
 0x3a3   :  { %982 = vsyncpa [#allocation6], 1 }
 0x3a4   :  { %983 = vsyncpa [#allocation9], 1 }
 0x3a5   :  { %984 = vsyncpa [#allocation12], 1 }
 0x3a6   :  { %985 = vsyncpa [#allocation4], 1 }
 0x3a7   :  { %987 = vsyncpa [#allocation4 + $0x1], 1 }

</bundles_post_ra>
